<compile_context>
chip_gen: v7x
topology: tpu7x:2x2x1
jax: 0.10.0
libtpu: 0.0.40
codegen_flags: <defaults>
</compile_context>

<pallas_src>
import jax
import jax.numpy as jnp
from jax.experimental import pallas as pl
from jax.experimental.pallas import tpu as pltpu


STATE_SIZE = 2     # MountainCar-v0 observation dim
ACTION_SIZE = 3    # MountainCar-v0 action count
HIDDEN = 24
A_PAD = 8          # fc3 output rows padded to 8 -> (8,128)-aligned output tiles

# Below ~1-2K samples XLA's fused path is at parity with the kernel (review item 6).
_MIN_KERNEL_BATCH = 1024


def _round_up(n, m):
    return ((n + m - 1) // m) * m


def _choose_tile_b(batch, max_tile_b=4096):
    """Pick a lane-tile size: multiple of 128, >=2 grid steps when the batch is
    big enough (v7x has 2 TensorCores), capped so per-step VMEM stays small and
    long grids amortize the fixed ~0.35us/step pipeline cost."""
    b128 = _round_up(max(batch, 1), 128)
    if b128 <= 256:
        return b128                       # tiny batch: single small tile, minimal padding
    return min(_round_up(-(-b128 // 2), 128), max_tile_b)


def qnetwork_kernel(x_ref, w1_ref, b1_ref, w2_ref, b2_ref, w3_ref, b3_ref, o_ref):
    """Feature-major fused forward (batch on the 128-wide lane axis).

    x_ref : (tile_b, S)   -- native PyTorch layout, tiled on the batch axis
    w1_ref: (H, S)   b1_ref: (H, 1)
    w2_ref: (H, H)   b2_ref: (H, 1)
    w3_ref: (A_PAD, H)  b3_ref: (A_PAD, 1)   (rows 3..7 are zero padding)
    o_ref : (A_PAD, tile_b)
    """
    x = x_ref[...]                                   # (tile_b, S)

    # fc1: contract over the shared S axis with x kept in its native layout.
    # This folds the (B,S)->(S,B) layout change into the matmul itself (the
    # Q @ K^T pattern), avoiding both a wrapper HBM round trip and an in-kernel
    # XLU relayout.  K=2 under-utilizes the MXU, but the MXU is otherwise idle.
    h1 = jax.lax.dot_general(
        w1_ref[...], x,
        dimension_numbers=(((1,), (1,)), ((), ())),  # (H,S) . (tile_b,S) -> (H, tile_b)
        preferred_element_type=jnp.float32,
    ) + b1_ref[...]                                  # bias broadcasts over lanes
    h1 = jnp.maximum(h1, 0.0)                        # relu(fc1)

    # fc2: 24x24 matmul on the MXU, batch stays on lanes.
    h2 = jnp.dot(w2_ref[...], h1, preferred_element_type=jnp.float32) + b2_ref[...]
    h2 = jnp.maximum(h2, 0.0)                        # relu(fc2)

    # fc3: (A_PAD, H) @ (H, tile_b) -> (A_PAD, tile_b); rows 3..7 come out zero.
    out = jnp.dot(w3_ref[...], h2, preferred_element_type=jnp.float32) + b3_ref[...]
    o_ref[...] = out.astype(o_ref.dtype)             # lane-dense, unmasked store


def qnetwork_apply_pallas(x, params, tile_b=None, max_tile_b=4096):
    """x: (B, STATE_SIZE) float32 -> transposed Q-values (ACTION_SIZE, B).

    Returns the kernel's native (A, B) layout so no batch-axis transpose copy is
    needed on the hot path; use `qnetwork_forward` for the (B, A) convenience API.
    """
    w1, b1, w2, b2, w3, b3 = params
    B = x.shape[0]

    if tile_b is None:
        tile_b = _choose_tile_b(B, max_tile_b)
    num_tiles = pl.cdiv(B, tile_b)
    b_pad = num_tiles * tile_b

    x = x.astype(jnp.float32)
    if b_pad != B:
        # Only the tail tile is padded; padded batch lanes never mix with real
        # lanes (all contractions are over the feature axis) and are sliced off.
        x = jnp.pad(x, ((0, b_pad - B), (0, 0)))

    # Pad fc3 to A_PAD=8 output rows -> (8,128)-aligned writeback slab (v5e win).
    w3p = jnp.pad(w3.astype(jnp.float32), ((0, A_PAD - ACTION_SIZE), (0, 0)))
    b3p = jnp.pad(b3.astype(jnp.float32), ((0, A_PAD - ACTION_SIZE), (0, 0)))

    # Constant index_maps: Pallas fetches these once and keeps them VMEM-resident
    # across the whole grid (block index never changes -> no per-step re-DMA).
    const = lambda shape: pl.BlockSpec(shape, lambda i: (0, 0))

    flops = 2 * b_pad * (STATE_SIZE * HIDDEN + HIDDEN * HIDDEN + HIDDEN * A_PAD)
    bytes_accessed = 4 * (
        b_pad * (STATE_SIZE + A_PAD)
        + HIDDEN * (STATE_SIZE + 1) + HIDDEN * (HIDDEN + 1) + A_PAD * (HIDDEN + 1)
    )

    q_t = pl.pallas_call(
        qnetwork_kernel,
        out_shape=jax.ShapeDtypeStruct((A_PAD, b_pad), jnp.float32),
        grid=(num_tiles,),
        in_specs=[
            pl.BlockSpec((tile_b, STATE_SIZE), lambda i: (i, 0)),   # x, native layout
            const((HIDDEN, STATE_SIZE)),                            # w1
            const((HIDDEN, 1)),                                     # b1
            const((HIDDEN, HIDDEN)),                                # w2
            const((HIDDEN, 1)),                                     # b2
            const((A_PAD, HIDDEN)),                                 # w3 (padded)
            const((A_PAD, 1)),                                      # b3 (padded)
        ],
        out_specs=pl.BlockSpec((A_PAD, tile_b), lambda i: (0, i)),
        compiler_params=pltpu.CompilerParams(
            dimension_semantics=("parallel",),   # batch tiles split across TCs on v7x
            vmem_limit_bytes=32 * 1024 * 1024,   # ample headroom even at tile_b=4096
        ),
        cost_estimate=pl.CostEstimate(
            flops=flops, transcendentals=0, bytes_accessed=bytes_accessed),
    )(x, w1.astype(jnp.float32), b1.astype(jnp.float32),
      w2.astype(jnp.float32), b2.astype(jnp.float32), w3p, b3p)

    return q_t[:ACTION_SIZE, :B]                 # drop padded action rows / batch lanes


def qnetwork_forward(x, params, tile_b=None):
    """(B, S) -> (B, A), matching the PyTorch forward.  Tiny batches use pure JAX."""
    if x.shape[0] < _MIN_KERNEL_BATCH:
        return reference_forward(x, params)
    return qnetwork_apply_pallas(x, params, tile_b=tile_b).T


def init_params(key):
    """PyTorch Linear default init: U(-1/sqrt(fan_in), +1/sqrt(fan_in)).

    Weights stored PyTorch-native (out_features, in_features); biases (out_features, 1).
    """
    keys = jax.random.split(key, 6)

    def linear(kw, kb, fan_in, fan_out):
        bound = 1.0 / jnp.sqrt(float(fan_in))
        w = jax.random.uniform(kw, (fan_out, fan_in), jnp.float32, -bound, bound)
        b = jax.random.uniform(kb, (fan_out, 1), jnp.float32, -bound, bound)
        return w, b

    w1, b1 = linear(keys[0], keys[1], STATE_SIZE, HIDDEN)
    w2, b2 = linear(keys[2], keys[3], HIDDEN, HIDDEN)
    w3, b3 = linear(keys[4], keys[5], HIDDEN, ACTION_SIZE)
    return (w1, b1, w2, b2, w3, b3)


def reference_forward(x, params):
    """Pure-JAX reference of the PyTorch forward (weights in (out, in) orientation)."""
    w1, b1, w2, b2, w3, b3 = params
    h1 = jnp.maximum(x @ w1.T + b1[:, 0], 0.0)
    h2 = jnp.maximum(h1 @ w2.T + b2[:, 0], 0.0)
    return h2 @ w3.T + b3[:, 0]


if __name__ == "__main__":
    key = jax.random.PRNGKey(0)
    kparams, kx = jax.random.split(key)
    params = init_params(kparams)

    # Small, padding-exercising batch: 300 -> two 256-lane tiles (multi-step grid
    # + tail padding), keeping the demo cheap while running the real kernel path.
    batch = 300
    x = jax.random.normal(kx, (batch, STATE_SIZE), jnp.float32)

    q_t = jax.block_until_ready(qnetwork_apply_pallas(x, params))
    ref = reference_forward(x, params)
    assert q_t.shape == (ACTION_SIZE, batch)
    assert jnp.allclose(q_t, ref.T, atol=1e-4, rtol=1e-4)

    # Small-batch dispatch path (single-env action selection) -> pure JAX, same numerics.
    x_small = x[:4]
    out_small = jax.block_until_ready(qnetwork_forward(x_small, params))
    assert out_small.shape == (4, ACTION_SIZE)
    assert jnp.allclose(out_small, reference_forward(x_small, params), atol=1e-4, rtol=1e-4)

    print("KERNEL_OK")
</pallas_src>

<mosaic_0001>
module attributes {stable_mosaic.version = 11 : i64} {
  func.func @qnetwork_kernel(%arg0: i32, %arg1: memref<256x2xf32, #tpu.memory_space<vmem>>, %arg2: memref<24x2xf32, #tpu.memory_space<vmem>>, %arg3: memref<24x1xf32, #tpu.memory_space<vmem>>, %arg4: memref<24x24xf32, #tpu.memory_space<vmem>>, %arg5: memref<24x1xf32, #tpu.memory_space<vmem>>, %arg6: memref<8x24xf32, #tpu.memory_space<vmem>>, %arg7: memref<8x1xf32, #tpu.memory_space<vmem>>, %arg8: memref<8x256xf32, #tpu.memory_space<vmem>>) attributes {dimension_semantics = [#tpu.dimension_semantics<parallel>], iteration_bounds = array<i64: 2>, scalar_prefetch = 0 : i64, scratch_operands = 0 : i64, tpu.core_type = #tpu.core_type<tc>, window_params = [{transform_indices = @transform_0, window_bounds = array<i64: 256, 2>}, {pipeline_mode = #tpu.pipeline_mode<synchronous>, transform_indices = @transform_1, window_bounds = array<i64: 24, 2>}, {pipeline_mode = #tpu.pipeline_mode<synchronous>, transform_indices = @transform_2, window_bounds = array<i64: 24, 1>}, {pipeline_mode = #tpu.pipeline_mode<synchronous>, transform_indices = @transform_3, window_bounds = array<i64: 24, 24>}, {pipeline_mode = #tpu.pipeline_mode<synchronous>, transform_indices = @transform_4, window_bounds = array<i64: 24, 1>}, {pipeline_mode = #tpu.pipeline_mode<synchronous>, transform_indices = @transform_5, window_bounds = array<i64: 8, 24>}, {pipeline_mode = #tpu.pipeline_mode<synchronous>, transform_indices = @transform_6, window_bounds = array<i64: 8, 1>}, {transform_indices = @transform_7, window_bounds = array<i64: 8, 256>}]} {
    %c0 = arith.constant 0 : index
    %c0_0 = arith.constant 0 : index
    %0 = vector.load %arg1[%c0, %c0_0] : memref<256x2xf32, #tpu.memory_space<vmem>>, vector<256x2xf32>
    %c0_1 = arith.constant 0 : index
    %c0_2 = arith.constant 0 : index
    %1 = vector.load %arg2[%c0_1, %c0_2] : memref<24x2xf32, #tpu.memory_space<vmem>>, vector<24x2xf32>
    %cst = arith.constant dense<0.000000e+00> : vector<24x256xf32>
    %2 = tpu.matmul %1, %0, %cst {dimension_numbers = #tpu.dot_dimension_numbers<[1], [1], [0], [0], [0, 0, 1, 0], [], []>} : vector<24x2xf32>, vector<256x2xf32>, vector<24x256xf32> -> vector<24x256xf32>
    %c0_3 = arith.constant 0 : index
    %c0_4 = arith.constant 0 : index
    %3 = vector.load %arg3[%c0_3, %c0_4] : memref<24x1xf32, #tpu.memory_space<vmem>>, vector<24x1xf32>
    %4 = vector.broadcast %3 : vector<24x1xf32> to vector<24x256xf32>
    %5 = arith.addf %2, %4 : vector<24x256xf32>
    %cst_5 = arith.constant 0.000000e+00 : f32
    %6 = vector.broadcast %cst_5 : f32 to vector<24x256xf32>
    %7 = arith.maximumf %5, %6 : vector<24x256xf32>
    %c0_6 = arith.constant 0 : index
    %c0_7 = arith.constant 0 : index
    %8 = vector.load %arg4[%c0_6, %c0_7] : memref<24x24xf32, #tpu.memory_space<vmem>>, vector<24x24xf32>
    %cst_8 = arith.constant dense<0.000000e+00> : vector<24x256xf32>
    %9 = tpu.matmul %8, %7, %cst_8 {dimension_numbers = #tpu.dot_dimension_numbers<[1], [0], [0], [1], [0, 0, 1, 1], [], []>} : vector<24x24xf32>, vector<24x256xf32>, vector<24x256xf32> -> vector<24x256xf32>
    %c0_9 = arith.constant 0 : index
    %c0_10 = arith.constant 0 : index
    %10 = vector.load %arg5[%c0_9, %c0_10] : memref<24x1xf32, #tpu.memory_space<vmem>>, vector<24x1xf32>
    %11 = vector.broadcast %10 : vector<24x1xf32> to vector<24x256xf32>
    %12 = arith.addf %9, %11 : vector<24x256xf32>
    %cst_11 = arith.constant 0.000000e+00 : f32
    %13 = vector.broadcast %cst_11 : f32 to vector<24x256xf32>
    %14 = arith.maximumf %12, %13 : vector<24x256xf32>
    %c0_12 = arith.constant 0 : index
    %c0_13 = arith.constant 0 : index
    %15 = vector.load %arg6[%c0_12, %c0_13] : memref<8x24xf32, #tpu.memory_space<vmem>>, vector<8x24xf32>
    %cst_14 = arith.constant dense<0.000000e+00> : vector<8x256xf32>
    %16 = tpu.matmul %15, %14, %cst_14 {dimension_numbers = #tpu.dot_dimension_numbers<[1], [0], [0], [1], [0, 0, 1, 1], [], []>} : vector<8x24xf32>, vector<24x256xf32>, vector<8x256xf32> -> vector<8x256xf32>
    %c0_15 = arith.constant 0 : index
    %c0_16 = arith.constant 0 : index
    %17 = vector.load %arg7[%c0_15, %c0_16] : memref<8x1xf32, #tpu.memory_space<vmem>>, vector<8x1xf32>
    %18 = vector.broadcast %17 : vector<8x1xf32> to vector<8x256xf32>
    %19 = arith.addf %16, %18 : vector<8x256xf32>
    %c0_17 = arith.constant 0 : index
    %c0_18 = arith.constant 0 : index
    %20 = vector.load %arg8[%c0_17, %c0_18] : memref<8x256xf32, #tpu.memory_space<vmem>>, vector<8x256xf32>
    tpu.vector_store %arg8[%c0_17, %c0_18], %19 {strides = array<i32>} : memref<8x256xf32, #tpu.memory_space<vmem>>, vector<8x256xf32>,
    return
  }
  func.func @transform_0(%arg0: i32) -> (i32, i32) {
    %c0_i32 = arith.constant 0 : i32
    %c0_i32_0 = arith.constant 0 : i32
    return %arg0, %c0_i32 : i32, i32
  }
  func.func @transform_1(%arg0: i32) -> (i32, i32) {
    %c0_i32 = arith.constant 0 : i32
    %c0_i32_0 = arith.constant 0 : i32
    %c0_i32_1 = arith.constant 0 : i32
    return %c0_i32, %c0_i32_0 : i32, i32
  }
  func.func @transform_2(%arg0: i32) -> (i32, i32) {
    %c0_i32 = arith.constant 0 : i32
    %c0_i32_0 = arith.constant 0 : i32
    %c0_i32_1 = arith.constant 0 : i32
    return %c0_i32, %c0_i32_0 : i32, i32
  }
  func.func @transform_3(%arg0: i32) -> (i32, i32) {
    %c0_i32 = arith.constant 0 : i32
    %c0_i32_0 = arith.constant 0 : i32
    %c0_i32_1 = arith.constant 0 : i32
    return %c0_i32, %c0_i32_0 : i32, i32
  }
  func.func @transform_4(%arg0: i32) -> (i32, i32) {
    %c0_i32 = arith.constant 0 : i32
    %c0_i32_0 = arith.constant 0 : i32
    %c0_i32_1 = arith.constant 0 : i32
    return %c0_i32, %c0_i32_0 : i32, i32
  }
  func.func @transform_5(%arg0: i32) -> (i32, i32) {
    %c0_i32 = arith.constant 0 : i32
    %c0_i32_0 = arith.constant 0 : i32
    %c0_i32_1 = arith.constant 0 : i32
    return %c0_i32, %c0_i32_0 : i32, i32
  }
  func.func @transform_6(%arg0: i32) -> (i32, i32) {
    %c0_i32 = arith.constant 0 : i32
    %c0_i32_0 = arith.constant 0 : i32
    %c0_i32_1 = arith.constant 0 : i32
    return %c0_i32, %c0_i32_0 : i32, i32
  }
  func.func @transform_7(%arg0: i32) -> (i32, i32) {
    %c0_i32 = arith.constant 0 : i32
    %c0_i32_0 = arith.constant 0 : i32
    return %c0_i32, %arg0 : i32, i32
  }
}

</mosaic_0001>

<bundles_post_ra>
// kernel: tpu_custom_call.1
= control target key start
LH: loop header
LB: loop body
LE: loop exit
PB: predicated region body
PF: predicated region fallthrough
CT: control target
= control target key end

     0   :  { %12 = vsyncpa [#allocation3], 0  ;;  %s1328_s0 = inlined_call_operand.vmem [shape: f32[512,2], index: 0, kind: input, shape index: {}]   ;;  %s1329_s1 = inlined_call_operand.vmem [shape: f32[24,2], index: 1, kind: input, shape index: {}]   ;;  %s1330_s2 = inlined_call_operand.vmem [shape: f32[24,1], index: 2, kind: input, shape index: {}]   ;;  %s1331_s3 = inlined_call_operand.vmem [shape: f32[24,24], index: 3, kind: input, shape index: {}]   ;;  %s1332_s4 = inlined_call_operand.vmem [shape: f32[24,1], index: 4, kind: input, shape index: {}]   ;;  %s1333_s5 = inlined_call_operand.vmem [shape: f32[8,24], index: 5, kind: input, shape index: {}]   ;;  %s1334_s6 = inlined_call_operand.vmem [shape: f32[8,1], index: 6, kind: input, shape index: {}]   ;;  %s1335_s7 = inlined_call_operand.hbm [shape: f32[8,512], index: 7, kind: output, shape index: {}]  }
   0x1   :  { %14 = vsyncpa [#allocation3 + $0x1], 0  ;;  %s1101_s24 = smov 0   ;;  %s1103_s25 = smov 0  }
   0x2   :  { %s1105_s26 = smov 0   ;;  %s1107_s27 = smov 0  }
   0x3 LB: > { %s1122_s28 = sadd.s32 4294967295, %s1056_s27   ;;  %s805_s29 = sadd.s32 4294967294, %s1056_s27   ;;  %s1056_s27 = sphi %s1107_s27, %s1343_s27   ;;  %s1052_s26 = sphi %s1105_s26, %s1342_s26   ;;  %s1048_s25 = sphi %s1103_s25, %s1341_s25   ;;  %s1044_s24 = sphi %s1101_s24, %s1340_s24  }
   0x4   : > { %s1126_s30 = sadd.s32 1, %s1056_s27   ;;  %s179_s8 = sadd.s32 1, %s1052_s26 }
   0x5   : > { %s176_s9 = ssub.s32 %s1056_s27, %s1126_s30  ;;  %p189_p0 = scmp.ne.s32.totalorder %s1052_s26, %s1048_s25 }
   0x6   : > { %p177_p1 = scmp.eq.s32.totalorder %s176_s9, 0  ;;  %p190_p2 = scmp.eq.s32.totalorder %s1122_s28, 1 }
   0x7   : > { %p195_p3 = scmp.ne.s32.totalorder %s1048_s25, %s1044_s24  ;;  %p196_p4 = scmp.eq.s32.totalorder %s805_s29, 1 }
   0x8   : > { %s1137_s10 = scalar_select %p177_p1, %s1052_s26, %s179_s8  }
   0x9   : > { %p1139_p5 = por %p190_p2, %p189_p0  ;;  %p1143_p6 = por %p196_p4, %p195_p3 }
   0xa   : > { %p808_p7 = scmp.ge.s32.totalorder %s1056_s27, 1  ;;  %p241_p8 = scmp.lt.s32.totalorder %s1056_s27, 3 }
   0xc   : > { %p242_p9 = pnand %p808_p7, %p241_p8 }
   0xd   : > { %s810_s13 = sshll.u32 (!%p242_p9), %s1122_s28, 5  ;;  %vm333_vm0 = vcmask (!%p242_p9), 15360   ;;  %v1153_v0 = vld [vmem:[%s1329_s1] sm:$0xff] (!%p242_p9)  ;;  %v1058_v1 = vmov (!%p242_p9), 0   ;;  %v317_v3 = vld [vmem:[%s1330_s2 + $0x10] sm:$0xff] (!%p242_p9)  ;;  %v316_v4 = vld [vmem:[%s1330_s2 + $0x8] sm:$0xff] (!%p242_p9) }
   0xe   : > { %245 = sbr.rel (%p242_p9) target bundleno = 778 (0x30a), region = 48  ;;  %p274_p10 = scmp.lt.s32.totalorder (!%p242_p9), %s810_s13, 63  ;;  %889 = vmatprep.mubr.msk.f32.mxu0 (!%p242_p9), %vm333_vm0, %v1153_v0  ;;  %992 = vset.pattern.permute.xlu0 (!%p242_p9), %v1058_v1  ;;  %v315_v2 = vld [vmem:[%s1330_s2] sm:$0xff] (!%p242_p9)  ;;  %vm1176_vm1 = vmpackc.low (!%p242_p9), %vm333_vm0, %vm333_vm0  ;;  %v532_v7 = vld [vmem:[%s1332_s4 + $0x8] sm:$0xff] (!%p242_p9)  ;;  %v1059_v60 = vmov (!%p242_p9), 0.0   ;;  %vm549_vm2 = vcmask (!%p242_p9), 195584  }
   0xf   : > { %320 = vperm.xlu0 (!%p242_p9), %992, %v315_v2   ;;  %993 = vset.pattern.permute.xlu1 (!%p242_p9), %v1058_v1  ;;  %v531_v5 = vld [vmem:[%s1332_s4] sm:$0xff] (!%p242_p9)  ;;  %v533_v8 = vld [vmem:[%s1332_s4 + $0x10] sm:$0xff] (!%p242_p9)  ;;  %v313_v58 = vld [vmem:[%s1329_s1 + $0x8] sm:$0xff] (!%p242_p9)  ;;  %s270_s18 = sand.u32 (!%p242_p9), 1, %s1048_s25   ;;  %s856_s20 = sshll.u32 (!%p242_p9), %s1122_s28, 8 }
  0x10   : > { %330 = vperm.xlu1 (!%p242_p9), %993, %v317_v3   ;;  %v649_v18 = vld [vmem:[%s1334_s6] sm:$0xff] (!%p242_p9)  ;;  %v314_v59 = vld [vmem:[%s1329_s1 + $0x10] sm:$0xff] (!%p242_p9)  ;;  %623 = vmatprep.mubr.f32.mxu1 (!%p242_p9), %v1059_v60  ;;  %s809_s19 = sshll.u32 (!%p242_p9), %s270_s18, 4  ;;  %s1286_s8 = scalar_lea.hbm (!%p242_p9), %s1335_s7, %s856_s20 }
  0x11   : > { %s272_s21 = scalar_lea.vmem (!%p242_p9), [#allocation2], %s809_s19  ;;  %s732_s28 = scalar_lea.sflag (!%p242_p9), [#allocation3], %s270_s18 }
  0x12   : > { %s746_s22 = sshll.u32 (!%p242_p9), %s272_s21, 4  ;;  %s1288_s22 = int_to_ptr.vmem [resolvable:$true] %s746_s22 }
  0x13   : > { %325 = vperm.xlu0 (!%p242_p9), %992, %v316_v4   ;;  %s994_s9 = scalar_lea.vmem (!%p242_p9), %s1288_s22, 256 }
  0x14   : > { %536 = vperm.xlu1 (!%p242_p9), %993, %v531_v5   ;;  %p995_p11 = scmp.ne.s32.totalorder (!%p242_p9), %s1288_s22, %s994_s9 }
  0x15   : > { %s1345_s13 = smov (!%p274_p10, %s810_s13), 63 }
  0x16   : > { %s811_s29 = sshll.u32 %s1345_s13, 3  ;;  %p996_p12 = pnand %p995_p11, %p1139_p5 }
  0x17   : > { %s1172_s14 = scalar_lea.vmem %s1328_s0, %s811_s29  ;;  %541 = vperm.xlu0 %992, %v532_v7  }
  0x18   : > { %v296_v9 = vld [vmem:[%s1172_s14 + $0x80] sm:$0xff]  ;;  %v297_v10 = vld [vmem:[%s1172_s14 + $0x88] sm:$0xff]  ;;  %v298_v14 = vld [vmem:[%s1172_s14 + $0x90] sm:$0xff]  ;;  %546 = vperm.xlu1 %993, %v533_v8   ;;  %p997_p13 = pneg %p996_p12 }
  0x19   : > { %v280_v11 = vld [vmem:[%s1172_s14] sm:$0xff]  ;;  %v895_v12 = vpack.c.bf16 %v297_v10, %v296_v9  ;;  %v281_v13 = vld [vmem:[%s1172_s14 + $0x8] sm:$0xff]  ;;  %v299_v15 = vld [vmem:[%s1172_s14 + $0x98] sm:$0xff] }
  0x1a   : > { %v898_v16 = vpack.c.bf16 %v281_v13, %v280_v11  ;;  %v901_v17 = vpack.c.bf16 %v299_v15, %v298_v14  ;;  %v282_v19 = vld [vmem:[%s1172_s14 + $0x10] sm:$0xff]  ;;  %v283_v20 = vld [vmem:[%s1172_s14 + $0x18] sm:$0xff]  ;;  %v300_v21 = vld [vmem:[%s1172_s14 + $0xa0] sm:$0xff] }
  0x1b   : > { %897 = vmatprep.subr.msk.bf16.mxu0 %vm1176_vm1, %v895_v12  ;;  %v301_v22 = vld [vmem:[%s1172_s14 + $0xa8] sm:$0xff]  ;;  %652 = vperm.xlu0 %992, %v649_v18   ;;  %v904_v23 = vpack.c.bf16 %v283_v20, %v282_v19  ;;  %v284_v25 = vld [vmem:[%s1172_s14 + $0x20] sm:$0xff]  ;;  %v302_v27 = vld [vmem:[%s1172_s14 + $0xb0] sm:$0xff] }
  0x1c   : > { %900 = vmatpush3.bf16.xpose.msk.msra.mxu0 %vm1176_vm1, %v898_v16  ;;  %v907_v24 = vpack.c.bf16 %v301_v22, %v300_v21  ;;  %v285_v26 = vld [vmem:[%s1172_s14 + $0x28] sm:$0xff]  ;;  %v303_v28 = vld [vmem:[%s1172_s14 + $0xb8] sm:$0xff]  ;;  %v286_v31 = vld [vmem:[%s1172_s14 + $0x30] sm:$0xff] }
  0x1d   : > { %903 = vmatprep.subr.msk.bf16.mxu0 %vm1176_vm1, %v901_v17  ;;  %v910_v29 = vpack.c.bf16 %v285_v26, %v284_v25  ;;  %v913_v30 = vpack.c.bf16 %v303_v28, %v302_v27  ;;  %v287_v32 = vld [vmem:[%s1172_s14 + $0x38] sm:$0xff]  ;;  %v304_v33 = vld [vmem:[%s1172_s14 + $0xc0] sm:$0xff]  ;;  %v305_v34 = vld [vmem:[%s1172_s14 + $0xc8] sm:$0xff] }
  0x1e   : > { %v916_v35 = vpack.c.bf16 %v287_v32, %v286_v31  ;;  %v919_v36 = vpack.c.bf16 %v305_v34, %v304_v33  ;;  %v288_v37 = vld [vmem:[%s1172_s14 + $0x40] sm:$0xff]  ;;  %v289_v38 = vld [vmem:[%s1172_s14 + $0x48] sm:$0xff]  ;;  %v306_v39 = vld [vmem:[%s1172_s14 + $0xd0] sm:$0xff] }
  0x1f   : > { %v307_v40 = vld [vmem:[%s1172_s14 + $0xd8] sm:$0xff]  ;;  %v922_v41 = vpack.c.bf16 %v289_v38, %v288_v37  ;;  %v290_v43 = vld [vmem:[%s1172_s14 + $0x50] sm:$0xff]  ;;  %v308_v45 = vld [vmem:[%s1172_s14 + $0xe0] sm:$0xff] }
  0x20   : > { %v925_v42 = vpack.c.bf16 %v307_v40, %v306_v39  ;;  %v291_v44 = vld [vmem:[%s1172_s14 + $0x58] sm:$0xff]  ;;  %v309_v46 = vld [vmem:[%s1172_s14 + $0xe8] sm:$0xff]  ;;  %v292_v49 = vld [vmem:[%s1172_s14 + $0x60] sm:$0xff] }
  0x21   : > { %v928_v47 = vpack.c.bf16 %v291_v44, %v290_v43  ;;  %v931_v48 = vpack.c.bf16 %v309_v46, %v308_v45  ;;  %v293_v50 = vld [vmem:[%s1172_s14 + $0x68] sm:$0xff]  ;;  %v310_v51 = vld [vmem:[%s1172_s14 + $0xf0] sm:$0xff]  ;;  %v311_v52 = vld [vmem:[%s1172_s14 + $0xf8] sm:$0xff] }
  0x22   : > { %v934_v53 = vpack.c.bf16 %v293_v50, %v292_v49  ;;  %v937_v54 = vpack.c.bf16 %v311_v52, %v310_v51  ;;  %v294_v55 = vld [vmem:[%s1172_s14 + $0x70] sm:$0xff]  ;;  %v295_v56 = vld [vmem:[%s1172_s14 + $0x78] sm:$0xff]  ;;  %v528_v20 = vld [vmem:[%s1331_s3] sm:$0xff]  ;;  %s1060_s14 = smov [#allocation2]  }
  0x23   : > { %v940_v57 = vpack.c.bf16 %v295_v56, %v294_v55  ;;  %v529_v21 = vld [vmem:[%s1331_s3 + $0x8] sm:$0xff]  ;;  %v530_v22 = vld [vmem:[%s1331_s3 + $0x10] sm:$0xff]  ;;  %v648_v46 = vld [vmem:[%s1333_s5] sm:$0xff]  ;;  %s998_s15 = sshll.u32 %s1060_s14, 4  ;;  %s999_s15 = int_to_ptr.vmem [resolvable:$false] %s998_s15 }
  0x24   : > { %906 = vmatpush3.bf16.xpose.msk.msra.mxu0 %vm1176_vm1, %v904_v23  ;;  %s1000_s13 = scalar_lea.vmem %s999_s15, 512  ;;  %p1001_p0 = scmp.lt.s32.totalorder %s1288_s22, %s999_s15 }
  0x25   : > { %909 = vmatprep.subr.msk.bf16.mxu0 %vm1176_vm1, %v907_v24  ;;  %p1002_p1 = scmp.lt.s32.totalorder %s1000_s13, %s994_s9 }
  0x27   : > { %p1003_p2 = por %p1002_p1, %p1001_p0 }
  0x29   : > { %p1004_p3 = pnand %p1003_p2, %p997_p13 }
  0x2c   : > { %912 = vmatpush3.bf16.xpose.msk.msra.mxu0 %vm1176_vm1, %v910_v29 }
  0x2d   : > { %915 = vmatprep.subr.msk.bf16.mxu0 %vm1176_vm1, %v913_v30 }
  0x34   : > { %918 = vmatpush3.bf16.xpose.msk.msra.mxu0 %vm1176_vm1, %v916_v35 }
  0x35   : > { %921 = vmatprep.subr.msk.bf16.mxu0 %vm1176_vm1, %v919_v36 }
  0x3c   : > { %924 = vmatpush3.bf16.xpose.msk.msra.mxu0 %vm1176_vm1, %v922_v41 }
  0x3d   : > { %927 = vmatprep.subr.msk.bf16.mxu0 %vm1176_vm1, %v925_v42 }
  0x44   : > { %930 = vmatpush3.bf16.xpose.msk.msra.mxu0 %vm1176_vm1, %v928_v47 }
  0x45   : > { %933 = vmatprep.subr.msk.bf16.mxu0 %vm1176_vm1, %v931_v48 }
  0x4c   : > { %936 = vmatpush3.bf16.xpose.msk.msra.mxu0 %vm1176_vm1, %v934_v53 }
  0x4d   : > { %939 = vmatprep.subr.msk.bf16.mxu0 %vm1176_vm1, %v937_v54 }
  0x54   : > { %942 = vmatpush3.bf16.xpose.msk.msra.mxu0 %vm1176_vm1, %v940_v57 }
  0x5b   : > { %890 = vmatmul.mubr.msk.f32.vlgmr.msra.gmra.mrb[0].mxu0 %vm333_vm0, %v1153_v0 }
  0x5c   : > { %891 = vmatprep.mubr.msk.f32.mxu0 %vm333_vm0, %v313_v58 }
  0x5f   : > { %892 = vmatmul.mubr.msk.f32.gmra.mrb[2].mxu0 %vm333_vm0, %v313_v58 }
  0x60   : > { %893 = vmatprep.mubr.msk.f32.mxu0 %vm333_vm0, %v314_v59 }
  0x63   : > { %894 = vmatmul.mubr.msk.f32.gmra.mrb[4].mxu0 %vm333_vm0, %v314_v59 }
  0x8e   : > { %v321_v61 = vpop.permute.xlu0 %320 }
  0x8f   : > { %v331_v12 = vpop.permute.xlu1 %330 }
  0x92   : > { %v326_v2 = vpop.permute.xlu0 %325 }
  0x93   : > { %v537_v25 = vpop.permute.xlu1 %536 }
  0x96   : > { %v542_v27 = vpop.permute.xlu0 %541 }
  0x97   : > { %v547_v38 = vpop.permute.xlu1 %546 }
  0x9a   : > { %v653_v47 = vpop.permute.xlu0 %652 }
 0x12e   : > { %v505_v62 = vpop.f32.mrb[0].mxu0 }
 0x12f   : > { %v507_v63 = vpop.f32.mrb[1].mxu0  ;;  %v506_v1 = vadd.f32 %v505_v62, %v321_v61 }
 0x130   : > { %v508_v0 = vadd.f32 %v507_v63, %v321_v61 }
 0x131   : > { %v522_v7 = vmax.f32 %v506_v1, 0.0 }
 0x132   : > { %v511_v3 = vpop.f32.mrb[2].mxu0  ;;  %v523_v9 = vmax.f32 %v508_v0, 0.0 }
 0x133   : > { %v512_v4 = vadd.f32 %v511_v3, %v326_v2  ;;  %v513_v5 = vpop.f32.mrb[3].mxu0 }
 0x134   : > { %v514_v6 = vadd.f32 %v513_v5, %v326_v2 }
 0x135   : > { %v524_v8 = vmax.f32 %v512_v4, 0.0 }
 0x136   : > { %v525_v10 = vmax.f32 %v514_v6, 0.0  ;;  %v517_v11 = vpop.f32.mrb[4].mxu0 }
 0x137   : > { %v519_v13 = vpop.f32.mrb[5].mxu0  ;;  %v945_v14 = vpack.c.bf16 %v524_v8, %v522_v7  ;;  %v518_v17 = vadd.f32 %v517_v11, %v331_v12 }
 0x138   : > { %v520_v15 = vadd.f32 %v519_v13, %v331_v12  ;;  %v943_v16 = vpack.c.bf16 %v525_v10, %v523_v9 }
 0x139   : > { %v526_v19 = vmax.f32 %v518_v17, 0.0 }
 0x13a   : > { %v527_v18 = vmax.f32 %v520_v15, 0.0  ;;  %944 = vmatprep.subr.bf16.mxu1 %v943_v16 }
 0x13b   : > { %946 = vmatpush1.bf16.msra.mxu1 %v945_v14 }
 0x13c   : > { %563 = vmatprep.subr.mxu1 %v527_v18 }
 0x13f   : > { %564 = vmatpush1.msra.mxu1 %v526_v19 }
 0x140   : > { %847 = vmatmul.mubr.msk.f32.vlgmr.msra.gmra.mrb[0].mxu1 %vm549_vm2, %v528_v20 }
 0x141   : > { %629 = vmatprep.mubr.f32.mxu1 %v1059_v60 }
 0x144   : > { %848 = vmatmul.mubr.msk.f32.gmra.mrb[2].mxu1 %vm549_vm2, %v529_v21 }
 0x145   : > { %635 = vmatprep.mubr.f32.mxu1 %v1059_v60 }
 0x148   : > { %849 = vmatmul.mubr.msk.f32.gmra.mrb[4].mxu1 %vm549_vm2, %v530_v22 }
 0x149   : > { %722 = vmatprep.mubr.f32.mxu1 %v1059_v60 }
 0x213   : > { %v625_v23 = vpop.f32.mrb[0].mxu1 }
 0x214   : > { %v627_v24 = vpop.f32.mrb[1].mxu1  ;;  %v626_v26 = vadd.f32 %v625_v23, %v537_v25 }
 0x215   : > { %v628_v28 = vadd.f32 %v627_v24, %v537_v25 }
 0x216   : > { %v642_v33 = vmax.f32 %v626_v26, 0.0 }
 0x217   : > { %v631_v29 = vpop.f32.mrb[2].mxu1  ;;  %v643_v35 = vmax.f32 %v628_v28, 0.0 }
 0x218   : > { %v632_v30 = vadd.f32 %v631_v29, %v542_v27  ;;  %v633_v31 = vpop.f32.mrb[3].mxu1 }
 0x219   : > { %v634_v32 = vadd.f32 %v633_v31, %v542_v27 }
 0x21a   : > { %v644_v34 = vmax.f32 %v632_v30, 0.0 }
 0x21b   : > { %v645_v36 = vmax.f32 %v634_v32, 0.0  ;;  %v637_v37 = vpop.f32.mrb[4].mxu1 }
 0x21c   : > { %v949_v39 = vpack.c.bf16 %v644_v34, %v642_v33  ;;  %v639_v40 = vpop.f32.mrb[5].mxu1  ;;  %v638_v43 = vadd.f32 %v637_v37, %v547_v38 }
 0x21d   : > { %v947_v41 = vpack.c.bf16 %v645_v36, %v643_v35  ;;  %v640_v42 = vadd.f32 %v639_v40, %v547_v38 }
 0x21e   : > { %v646_v45 = vmax.f32 %v638_v43, 0.0 }
 0x21f   : > { %v647_v44 = vmax.f32 %v640_v42, 0.0  ;;  %948 = vmatprep.subr.bf16.mxu1 %v947_v41 }
 0x220   : > { %950 = vmatpush1.bf16.msra.mxu1 %v949_v39 }
 0x221   : > { %662 = vmatprep.subr.mxu1 %v647_v44 }
 0x224   : > { %663 = vmatpush1.msra.mxu1 %v646_v45 }
 0x225   : > { %850 = vmatmul.mubr.msk.f32.vlgmr.msra.gmra.mrb[6].mxu1 %vm549_vm2, %v648_v46 }
 0x2f8   : > { %v724_v48 = vpop.f32.mrb[6].mxu1 }
 0x2f9   : > { %v725_v49 = vadd.f32 %v724_v48, %v653_v47  ;;  %v726_v50 = vpop.f32.mrb[7].mxu1 }
 0x2fa   : > { %v727_v51 = vadd.f32 %v726_v50, %v653_v47 }
 0x2fb   : > { %729 = vst [vmem:[%s272_s21] sm:$0xff] %v725_v49 }
 0x2fc   : > { %730 = vst [vmem:[%s272_s21 + $0x8] sm:$0xff] %v727_v51 }
 0x2fd   : > { %1007 = shalt.err (!%p1004_p3)
}
 0x2fe   : > { %s1008_s16 = scalar_lea.hbm %s1286_s8, 256  ;;  %s1012_s19 = scalar_lea.hbm %s1335_s7, 512 }
 0x2ff   : > { %p1009_p4 = scmp.ne.s32.totalorder %s1286_s8, %s1008_s16  ;;  %p1013_p9 = scmp.lt.u32.totalorder %s1286_s8, %s1335_s7 }
 0x300   : > { %p1014_p10 = scmp.lt.u32.totalorder %s1012_s19, %s1008_s16  ;;  %p1016_p12 = scmp.lt.u32.totalorder %s1008_s16, %s1286_s8 }
 0x301   : > { %p1010_p7 = pnand %p1009_p4, %p1139_p5 }
 0x302   : > { %p1015_p11 = por %p1014_p10, %p1013_p9 }
 0x303   : > { %p1011_p8 = pneg %p1010_p7 }
 0x304   : > { %p1017_p13 = por %p1016_p12, %p1015_p11 }
 0x306   : > { %p1018_p0 = pnand %p1017_p13, %p1011_p8 }
 0x308   : > { %1021 = shalt.err (!%p1018_p0)
}
 0x309   : > { %951 = dma.vmem_to_hbm [thread:$0]  (%p1139_p5), %s1288_s22, 256, %s1286_s8, %s732_s28  }
 0x30a PF: > { %p957_p1 = scmp.ge.s32.totalorder %s1056_s27, 2  ;;  %s758_s23 = sand.u32 1, %s1044_s24  }
 0x30b   : > { %s759_s29 = scalar_lea.sflag [#allocation3], %s758_s23 }
 0x30c   : > { %p954_p2 = pnand %p957_p1, %p1143_p6 }
 0x30e   : > { %1039 = dma.done.wait (!%p954_p2), %s759_s29, 256  }
 0x30f   : > { %1041 = vsyncadd (!%p954_p2), %s759_s29, 4294967040  ;;  %p17_p3 = scmp.ge.s32.totalorder %s1126_s30, 4   ;;  %s1340_s24 = smov %s1048_s25 }
 0x310   : > { %s1341_s25 = smov %s1052_s26  ;;  %s1342_s26 = smov %s1137_s10 }
 0x311   : > { %s1343_s27 = smov %s1126_s30  ;;  %19 = sbr.rel (!%p17_p3) target bundleno = 3 (0x3), region = 83 }
 0x318   :  { %764 = vsyncpa [#allocation3], 1 }
 0x319   :  { %766 = vsyncpa [#allocation3 + $0x1], 1 }

</bundles_post_ra>
